<compile_context>
chip_gen: v6e
topology: v6e:2x2x1
jax: 0.10.0
libtpu: 0.0.40
codegen_flags: <defaults>
</compile_context>

<pallas_src>
import functools
import numpy as np
import jax
import jax.numpy as jnp
from jax.experimental import pallas as pl
from jax.experimental.pallas import tpu as pltpu

EPS = 1e-6


def _resident_spec(shape):
    """Whole-array block, same at every grid step (weights stay resident in VMEM)."""
    nd = len(shape)
    return pl.BlockSpec(shape, lambda i, _nd=nd: (0,) * _nd)


def _pick_block_b(B):
    """Largest batch block that divides B, prefers multiples of 8 (ideally >=128)
    while keeping at least 2 grid steps so both v7x TensorCores get work."""
    mult8 = [c for c in (512, 256, 128, 64, 32, 16, 8) if B % c == 0]
    for c in mult8:
        if B // c >= 2:
            return c
    if mult8:
        return mult8[0]
    return B


def _make_encoder_kernel(nlayers):
    L = nlayers

    def kernel(x_ref, wlin_ref, blin_ref, wvfc_ref, battn_ref,
               w1_ref, bffn_ref, w2_ref, gfin_ref, bfin_ref, out_ref):
        D = out_ref.shape[-1]
        inv_nm1 = 1.0 / (D - 1)

        def norm_core(v):
            # (x - mean) / (std + eps), unbiased (N-1) std, matching the torch module.
            # gamma/beta of the per-layer norms are pre-folded into the next matmul.
            mean = jnp.mean(v, axis=-1, keepdims=True)
            diff = v - mean
            var = jnp.sum(diff * diff, axis=-1, keepdims=True) * inv_nm1
            return diff * pl.reciprocal(jnp.sqrt(var) + EPS, approx=False)

        def mm(a, w):
            # bf16-weight path: feed the MXU matching dtypes, accumulate in f32.
            if w.dtype != jnp.float32:
                a = a.astype(w.dtype)
            return jnp.dot(a, w, preferred_element_type=jnp.float32)

        # input projection: nn.Linear(nsamples+103, d_model) with bias.
        h = mm(x_ref[...], wlin_ref[...]) + blin_ref[...]

        for l in range(L):   # static unroll; L is small and known at trace time
            # --- MultiHeadAttention (pre-norm).  seq_len == 1 -> softmax == 1 ->
            #     context == V, so:  h += LN(h) @ (diag(g)·Wv·Wfc) + (b·Wv·Wfc)
            h = h + mm(norm_core(h), wvfc_ref[l]) + battn_ref[l:l + 1, :]
            # --- Position-wise FFN (pre-norm), gamma/beta folded into W1 + bias.
            hid = jnp.maximum(mm(norm_core(h), w1_ref[l]) + bffn_ref[l:l + 1, :], 0.0)
            h = h + mm(hid, w2_ref[l])

        # Encoder-level final LayerNorm (gamma/beta applied explicitly).
        out_ref[...] = (gfin_ref[...] * norm_core(h) + bfin_ref[...]).astype(out_ref.dtype)

    return kernel


def encoder_pallas(x, params, *, nheads, d_k, block_b=None, param_dtype=jnp.float32):
    """x: [B, nsamples+103].  Returns (out [B, d_model], [attn [B, H, 1, 1]] * nlayers)."""
    B, n_in = x.shape
    L, D, HD = params["Wv"].shape
    F = params["W1"].shape[-1]
    if block_b is None:
        block_b = _pick_block_b(B)
    assert B % block_b == 0, "batch must be a multiple of block_b"

    g, b = params["ln_gamma"], params["ln_beta"]          # [2L+1, D]
    g_attn, b_attn = g[0:2 * L:2], b[0:2 * L:2]           # [L, D]
    g_ffn, b_ffn = g[1:2 * L:2], b[1:2 * L:2]             # [L, D]

    # context == V (seq_len == 1) -> the two attention projections compose exactly.
    Wvfc = jnp.einsum("ldh,lhe->lde", params["Wv"], params["Wfc"])   # [L, D, D]
    # Fold LayerNorm gamma (row scale) / beta (extra bias) into the next projection.
    Wvfc_f = g_attn[:, :, None] * Wvfc                               # diag(g) @ Wvfc
    battn = jnp.einsum("ld,lde->le", b_attn, Wvfc)                   # [L, D]
    W1_f = g_ffn[:, :, None] * params["W1"]                          # [L, D, F]
    bffn = jnp.einsum("ld,ldf->lf", b_ffn, params["W1"])             # [L, F]
    gfin, bfin = g[2 * L:2 * L + 1], b[2 * L:2 * L + 1]              # [1, D]

    cast = lambda a: a.astype(param_dtype)
    weights = (cast(params["Wlin"]), cast(params["blin"]),
               cast(Wvfc_f), cast(battn), cast(W1_f), cast(bffn),
               cast(params["W2"]),
               gfin.astype(jnp.float32), bfin.astype(jnp.float32))
    args = (x,) + weights

    in_specs = [pl.BlockSpec((block_b, n_in), lambda i: (i, 0))]
    in_specs += [_resident_spec(np.shape(a)) for a in weights]

    wbytes = sum(int(np.prod(np.shape(a))) * jnp.dtype(a.dtype).itemsize for a in weights)
    matmul_flops = 2 * B * (n_in * D + L * (D * D + D * F + F * D))
    cost = pl.CostEstimate(
        flops=matmul_flops,
        transcendentals=2 * B * (2 * L + 1),               # sqrt + reciprocal per row per norm
        bytes_accessed=4 * B * (n_in + D) + wbytes,
    )
    # resident weights are double-buffered by default + pipelined x/out blocks + slack.
    vmem_need = 2 * wbytes + 4 * 4 * block_b * (n_in + 2 * D + F) + (2 << 20)
    vmem_limit = int(min(max(vmem_need, 32 << 20), 64 << 20))

    out = pl.pallas_call(
        _make_encoder_kernel(L),
        grid=(B // block_b,),
        in_specs=in_specs,
        out_specs=pl.BlockSpec((block_b, D), lambda i: (i, 0)),
        out_shape=jax.ShapeDtypeStruct((B, D), jnp.float32),
        compiler_params=pltpu.CompilerParams(
            dimension_semantics=("parallel",),
            vmem_limit_bytes=vmem_limit),
        cost_estimate=cost,
    )(*args)

    # Each layer's attention map is softmax over a size-1 axis == exactly 1.0
    # (attention dropout is identity in eval mode), so it is a constant — produced
    # here instead of as a masked 4-lane store inside the kernel.
    attns = [jnp.ones((B, nheads, 1, 1), jnp.float32) for _ in range(L)]
    return out, attns


def encoder_ref(x, params, *, nheads, d_k):
    """Pure-JAX mirror of the torch Encoder forward (keeps the full Q/K/softmax path)."""
    P = jax.lax.Precision.HIGHEST
    L, _, HD = params["Wv"].shape
    B = x.shape[0]

    def ln(v, g, b):
        mean = jnp.mean(v, axis=-1, keepdims=True)
        diff = v - mean
        std = jnp.sqrt(jnp.sum(diff * diff, axis=-1, keepdims=True) / (v.shape[-1] - 1))
        return g * diff / (std + EPS) + b

    h = jnp.dot(x, params["Wlin"], precision=P) + params["blin"]
    attns = []
    for l in range(L):
        xn = ln(h, params["ln_gamma"][2 * l], params["ln_beta"][2 * l])
        q = jnp.dot(xn, params["Wq"][l], precision=P).reshape(B, 1, nheads, d_k).transpose(0, 2, 1, 3)
        k = jnp.dot(xn, params["Wk"][l], precision=P).reshape(B, 1, nheads, d_k).transpose(0, 2, 1, 3)
        v = jnp.dot(xn, params["Wv"][l], precision=P).reshape(B, 1, nheads, d_k).transpose(0, 2, 1, 3)
        scores = jnp.einsum("bhqd,bhkd->bhqk", q, k, precision=P) / np.sqrt(d_k)
        attn = jax.nn.softmax(scores, axis=-1)                        # == 1.0 (singleton axis)
        context = jnp.einsum("bhqk,bhkd->bhqd", attn, v, precision=P)
        context = context.transpose(0, 2, 1, 3).reshape(B, nheads * d_k)
        h = h + jnp.dot(context, params["Wfc"][l], precision=P)
        attns.append(attn)
        yn = ln(h, params["ln_gamma"][2 * l + 1], params["ln_beta"][2 * l + 1])
        h = h + jnp.dot(jnp.maximum(jnp.dot(yn, params["W1"][l], precision=P), 0.0),
                        params["W2"][l], precision=P)
    out = ln(h, params["ln_gamma"][2 * L], params["ln_beta"][2 * L])
    return out, attns


if __name__ == "__main__":
    # Small but lane-dense shapes: input width, d_model, d_ff all multiples of 128
    # so stores are unmasked and MXU lanes stay full (preserve this at prod sizes).
    nsamples = 25                       # -> input width nsamples + 103 = 128
    B, d_model, d_ff, d_k, nheads, nlayers = 16, 128, 256, 32, 4, 2
    n_in = nsamples + 103
    HD = nheads * d_k

    key = jax.random.PRNGKey(0)
    ks = jax.random.split(key, 10)
    x = jax.random.normal(ks[0], (B, n_in), jnp.float32)

    def winit(k, shape, scale=0.05):
        return scale * jax.random.normal(k, shape, jnp.float32)

    params = {
        # input projection weight/bias, stored [in, out]
        "Wlin": winit(ks[1], (n_in, d_model)),
        "blin": winit(ks[2], (1, d_model)),
        # LayerNorm params packed: rows [2l]=attn-norm, [2l+1]=ffn-norm, [2L]=final norm
        "ln_gamma": jnp.ones((2 * nlayers + 1, d_model), jnp.float32),
        "ln_beta": jnp.zeros((2 * nlayers + 1, d_model), jnp.float32),
        # per-layer Linear weights stacked on a leading layer axis, stored [in, out]
        "Wq": winit(ks[3], (nlayers, d_model, HD)),   # used only by the reference:
        "Wk": winit(ks[4], (nlayers, d_model, HD)),   # attn == 1 -> output-irrelevant
        "Wv": winit(ks[5], (nlayers, d_model, HD)),
        "Wfc": winit(ks[6], (nlayers, HD, d_model)),
        "W1": winit(ks[7], (nlayers, d_model, d_ff)),
        "W2": winit(ks[8], (nlayers, d_ff, d_model)),
    }

    # param_dtype=jnp.bfloat16 is the recommended production setting on v6e/v7x
    # (halves weight DMA/VMEM, f32 accumulation kept); f32 here for exact validation.
    run = jax.jit(functools.partial(encoder_pallas, nheads=nheads, d_k=d_k))
    out, attns = run(x, params)
    jax.block_until_ready((out, attns))

    ref_out, ref_attns = encoder_ref(x, params, nheads=nheads, d_k=d_k)
    assert out.shape == (B, d_model)
    assert len(attns) == nlayers and all(a.shape == (B, nheads, 1, 1) for a in attns)
    # Tolerance covers MXU f32 pass differences vs. the HIGHEST-precision XLA reference
    # (the in-kernel layernorm reciprocal is now exact).
    np.testing.assert_allclose(np.asarray(out), np.asarray(ref_out), rtol=1e-2, atol=1e-2)
    for a, ra in zip(attns, ref_attns):
        np.testing.assert_allclose(np.asarray(a), np.asarray(ra), rtol=0, atol=0)

    print("KERNEL_OK")
</pallas_src>

<mosaic_0001>
module attributes {stable_mosaic.version = 11 : i64} {
  func.func @kernel(%arg0: i32, %arg1: memref<8x128xf32, #tpu.memory_space<vmem>>, %arg2: memref<128x128xf32, #tpu.memory_space<vmem>>, %arg3: memref<1x128xf32, #tpu.memory_space<vmem>>, %arg4: memref<2x128x128xf32, #tpu.memory_space<vmem>>, %arg5: memref<2x128xf32, #tpu.memory_space<vmem>>, %arg6: memref<2x128x256xf32, #tpu.memory_space<vmem>>, %arg7: memref<2x256xf32, #tpu.memory_space<vmem>>, %arg8: memref<2x256x128xf32, #tpu.memory_space<vmem>>, %arg9: memref<1x128xf32, #tpu.memory_space<vmem>>, %arg10: memref<1x128xf32, #tpu.memory_space<vmem>>, %arg11: memref<8x128xf32, #tpu.memory_space<vmem>>) attributes {dimension_semantics = [#tpu.dimension_semantics<parallel>], iteration_bounds = array<i64: 2>, scalar_prefetch = 0 : i64, scratch_operands = 0 : i64, tpu.core_type = #tpu.core_type<tc>, window_params = [{transform_indices = @transform_0, window_bounds = array<i64: 8, 128>}, {pipeline_mode = #tpu.pipeline_mode<synchronous>, transform_indices = @transform_1, window_bounds = array<i64: 128, 128>}, {pipeline_mode = #tpu.pipeline_mode<synchronous>, transform_indices = @transform_2, window_bounds = array<i64: 1, 128>}, {pipeline_mode = #tpu.pipeline_mode<synchronous>, transform_indices = @transform_3, window_bounds = array<i64: 2, 128, 128>}, {pipeline_mode = #tpu.pipeline_mode<synchronous>, transform_indices = @transform_4, window_bounds = array<i64: 2, 128>}, {pipeline_mode = #tpu.pipeline_mode<synchronous>, transform_indices = @transform_5, window_bounds = array<i64: 2, 128, 256>}, {pipeline_mode = #tpu.pipeline_mode<synchronous>, transform_indices = @transform_6, window_bounds = array<i64: 2, 256>}, {pipeline_mode = #tpu.pipeline_mode<synchronous>, transform_indices = @transform_7, window_bounds = array<i64: 2, 256, 128>}, {pipeline_mode = #tpu.pipeline_mode<synchronous>, transform_indices = @transform_8, window_bounds = array<i64: 1, 128>}, {pipeline_mode = #tpu.pipeline_mode<synchronous>, transform_indices = @transform_9, window_bounds = array<i64: 1, 128>}, {transform_indices = @transform_10, window_bounds = array<i64: 8, 128>}]} {
    %c0 = arith.constant 0 : index
    %c0_0 = arith.constant 0 : index
    %0 = vector.load %arg1[%c0, %c0_0] : memref<8x128xf32, #tpu.memory_space<vmem>>, vector<8x128xf32>
    %c0_1 = arith.constant 0 : index
    %c0_2 = arith.constant 0 : index
    %1 = vector.load %arg2[%c0_1, %c0_2] : memref<128x128xf32, #tpu.memory_space<vmem>>, vector<128x128xf32>
    %cst = arith.constant dense<0.000000e+00> : vector<8x128xf32>
    %2 = tpu.matmul %0, %1, %cst {dimension_numbers = #tpu.dot_dimension_numbers<[1], [0], [0], [1], [0, 0, 1, 1], [], []>} : vector<8x128xf32>, vector<128x128xf32>, vector<8x128xf32> -> vector<8x128xf32>
    %c0_3 = arith.constant 0 : index
    %c0_4 = arith.constant 0 : index
    %3 = vector.load %arg3[%c0_3, %c0_4] : memref<1x128xf32, #tpu.memory_space<vmem>>, vector<1x128xf32>
    %4 = vector.broadcast %3 : vector<1x128xf32> to vector<8x128xf32>
    %5 = arith.addf %2, %4 : vector<8x128xf32>
    %cst_5 = arith.constant dense<0.000000e+00> : vector<8xf32>
    %6 = vector.multi_reduction <add>, %5, %cst_5 [1] : vector<8x128xf32> to vector<8xf32>
    %7 = vector.shape_cast %6 : vector<8xf32> to vector<8x1xf32>
    %cst_6 = arith.constant 1.280000e+02 : f32
    %8 = vector.broadcast %cst_6 : f32 to vector<8x1xf32>
    %9 = arith.divf %7, %8 : vector<8x1xf32>
    %10 = vector.broadcast %9 : vector<8x1xf32> to vector<8x128xf32>
    %11 = arith.subf %5, %10 : vector<8x128xf32>
    %12 = arith.mulf %11, %11 : vector<8x128xf32>
    %cst_7 = arith.constant dense<0.000000e+00> : vector<8xf32>
    %13 = vector.multi_reduction <add>, %12, %cst_7 [1] : vector<8x128xf32> to vector<8xf32>
    %14 = vector.shape_cast %13 : vector<8xf32> to vector<8x1xf32>
    %cst_8 = arith.constant 0.00787401571 : f32
    %15 = vector.broadcast %cst_8 : f32 to vector<8x1xf32>
    %16 = arith.mulf %14, %15 : vector<8x1xf32>
    %17 = math.sqrt %16 : vector<8x1xf32>
    %cst_9 = arith.constant 9.99999997E-7 : f32
    %18 = vector.broadcast %cst_9 : f32 to vector<8x1xf32>
    %19 = arith.addf %17, %18 : vector<8x1xf32>
    %20 = tpu.reciprocal %19 : vector<8x1xf32> -> vector<8x1xf32>
    %21 = vector.broadcast %20 : vector<8x1xf32> to vector<8x128xf32>
    %22 = arith.mulf %11, %21 : vector<8x128xf32>
    %c0_10 = arith.constant 0 : index
    %c0_11 = arith.constant 0 : index
    %c0_12 = arith.constant 0 : index
    %23 = vector.load %arg4[%c0_10, %c0_11, %c0_12] : memref<2x128x128xf32, #tpu.memory_space<vmem>>, vector<1x128x128xf32>
    %24 = vector.shape_cast %23 : vector<1x128x128xf32> to vector<128x128xf32>
    %cst_13 = arith.constant dense<0.000000e+00> : vector<8x128xf32>
    %25 = tpu.matmul %22, %24, %cst_13 {dimension_numbers = #tpu.dot_dimension_numbers<[1], [0], [0], [1], [0, 0, 1, 1], [], []>} : vector<8x128xf32>, vector<128x128xf32>, vector<8x128xf32> -> vector<8x128xf32>
    %26 = arith.addf %5, %25 : vector<8x128xf32>
    %c0_14 = arith.constant 0 : index
    %c0_15 = arith.constant 0 : index
    %27 = vector.load %arg5[%c0_14, %c0_15] : memref<2x128xf32, #tpu.memory_space<vmem>>, vector<1x128xf32>
    %28 = vector.broadcast %27 : vector<1x128xf32> to vector<8x128xf32>
    %29 = arith.addf %26, %28 : vector<8x128xf32>
    %cst_16 = arith.constant dense<0.000000e+00> : vector<8xf32>
    %30 = vector.multi_reduction <add>, %29, %cst_16 [1] : vector<8x128xf32> to vector<8xf32>
    %31 = vector.shape_cast %30 : vector<8xf32> to vector<8x1xf32>
    %cst_17 = arith.constant 1.280000e+02 : f32
    %32 = vector.broadcast %cst_17 : f32 to vector<8x1xf32>
    %33 = arith.divf %31, %32 : vector<8x1xf32>
    %34 = vector.broadcast %33 : vector<8x1xf32> to vector<8x128xf32>
    %35 = arith.subf %29, %34 : vector<8x128xf32>
    %36 = arith.mulf %35, %35 : vector<8x128xf32>
    %cst_18 = arith.constant dense<0.000000e+00> : vector<8xf32>
    %37 = vector.multi_reduction <add>, %36, %cst_18 [1] : vector<8x128xf32> to vector<8xf32>
    %38 = vector.shape_cast %37 : vector<8xf32> to vector<8x1xf32>
    %cst_19 = arith.constant 0.00787401571 : f32
    %39 = vector.broadcast %cst_19 : f32 to vector<8x1xf32>
    %40 = arith.mulf %38, %39 : vector<8x1xf32>
    %41 = math.sqrt %40 : vector<8x1xf32>
    %cst_20 = arith.constant 9.99999997E-7 : f32
    %42 = vector.broadcast %cst_20 : f32 to vector<8x1xf32>
    %43 = arith.addf %41, %42 : vector<8x1xf32>
    %44 = tpu.reciprocal %43 : vector<8x1xf32> -> vector<8x1xf32>
    %45 = vector.broadcast %44 : vector<8x1xf32> to vector<8x128xf32>
    %46 = arith.mulf %35, %45 : vector<8x128xf32>
    %c0_21 = arith.constant 0 : index
    %c0_22 = arith.constant 0 : index
    %c0_23 = arith.constant 0 : index
    %47 = vector.load %arg6[%c0_21, %c0_22, %c0_23] : memref<2x128x256xf32, #tpu.memory_space<vmem>>, vector<1x128x256xf32>
    %48 = vector.shape_cast %47 : vector<1x128x256xf32> to vector<128x256xf32>
    %cst_24 = arith.constant dense<0.000000e+00> : vector<8x256xf32>
    %49 = tpu.matmul %46, %48, %cst_24 {dimension_numbers = #tpu.dot_dimension_numbers<[1], [0], [0], [1], [0, 0, 1, 1], [], []>} : vector<8x128xf32>, vector<128x256xf32>, vector<8x256xf32> -> vector<8x256xf32>
    %c0_25 = arith.constant 0 : index
    %c0_26 = arith.constant 0 : index
    %50 = vector.load %arg7[%c0_25, %c0_26] : memref<2x256xf32, #tpu.memory_space<vmem>>, vector<1x256xf32>
    %51 = vector.broadcast %50 : vector<1x256xf32> to vector<8x256xf32>
    %52 = arith.addf %49, %51 : vector<8x256xf32>
    %cst_27 = arith.constant 0.000000e+00 : f32
    %53 = vector.broadcast %cst_27 : f32 to vector<8x256xf32>
    %54 = arith.maximumf %52, %53 : vector<8x256xf32>
    %c0_28 = arith.constant 0 : index
    %c0_29 = arith.constant 0 : index
    %c0_30 = arith.constant 0 : index
    %55 = vector.load %arg8[%c0_28, %c0_29, %c0_30] : memref<2x256x128xf32, #tpu.memory_space<vmem>>, vector<1x256x128xf32>
    %56 = vector.shape_cast %55 : vector<1x256x128xf32> to vector<256x128xf32>
    %cst_31 = arith.constant dense<0.000000e+00> : vector<8x128xf32>
    %57 = tpu.matmul %54, %56, %cst_31 {dimension_numbers = #tpu.dot_dimension_numbers<[1], [0], [0], [1], [0, 0, 1, 1], [], []>} : vector<8x256xf32>, vector<256x128xf32>, vector<8x128xf32> -> vector<8x128xf32>
    %58 = arith.addf %29, %57 : vector<8x128xf32>
    %cst_32 = arith.constant dense<0.000000e+00> : vector<8xf32>
    %59 = vector.multi_reduction <add>, %58, %cst_32 [1] : vector<8x128xf32> to vector<8xf32>
    %60 = vector.shape_cast %59 : vector<8xf32> to vector<8x1xf32>
    %cst_33 = arith.constant 1.280000e+02 : f32
    %61 = vector.broadcast %cst_33 : f32 to vector<8x1xf32>
    %62 = arith.divf %60, %61 : vector<8x1xf32>
    %63 = vector.broadcast %62 : vector<8x1xf32> to vector<8x128xf32>
    %64 = arith.subf %58, %63 : vector<8x128xf32>
    %65 = arith.mulf %64, %64 : vector<8x128xf32>
    %cst_34 = arith.constant dense<0.000000e+00> : vector<8xf32>
    %66 = vector.multi_reduction <add>, %65, %cst_34 [1] : vector<8x128xf32> to vector<8xf32>
    %67 = vector.shape_cast %66 : vector<8xf32> to vector<8x1xf32>
    %cst_35 = arith.constant 0.00787401571 : f32
    %68 = vector.broadcast %cst_35 : f32 to vector<8x1xf32>
    %69 = arith.mulf %67, %68 : vector<8x1xf32>
    %70 = math.sqrt %69 : vector<8x1xf32>
    %cst_36 = arith.constant 9.99999997E-7 : f32
    %71 = vector.broadcast %cst_36 : f32 to vector<8x1xf32>
    %72 = arith.addf %70, %71 : vector<8x1xf32>
    %73 = tpu.reciprocal %72 : vector<8x1xf32> -> vector<8x1xf32>
    %74 = vector.broadcast %73 : vector<8x1xf32> to vector<8x128xf32>
    %75 = arith.mulf %64, %74 : vector<8x128xf32>
    %c1 = arith.constant 1 : index
    %c0_37 = arith.constant 0 : index
    %c0_38 = arith.constant 0 : index
    %76 = vector.load %arg4[%c1, %c0_37, %c0_38] : memref<2x128x128xf32, #tpu.memory_space<vmem>>, vector<1x128x128xf32>
    %77 = vector.shape_cast %76 : vector<1x128x128xf32> to vector<128x128xf32>
    %cst_39 = arith.constant dense<0.000000e+00> : vector<8x128xf32>
    %78 = tpu.matmul %75, %77, %cst_39 {dimension_numbers = #tpu.dot_dimension_numbers<[1], [0], [0], [1], [0, 0, 1, 1], [], []>} : vector<8x128xf32>, vector<128x128xf32>, vector<8x128xf32> -> vector<8x128xf32>
    %79 = arith.addf %58, %78 : vector<8x128xf32>
    %c1_40 = arith.constant 1 : index
    %c0_41 = arith.constant 0 : index
    %80 = vector.load %arg5[%c1_40, %c0_41] : memref<2x128xf32, #tpu.memory_space<vmem>>, vector<1x128xf32>
    %81 = vector.broadcast %80 : vector<1x128xf32> to vector<8x128xf32>
    %82 = arith.addf %79, %81 : vector<8x128xf32>
    %cst_42 = arith.constant dense<0.000000e+00> : vector<8xf32>
    %83 = vector.multi_reduction <add>, %82, %cst_42 [1] : vector<8x128xf32> to vector<8xf32>
    %84 = vector.shape_cast %83 : vector<8xf32> to vector<8x1xf32>
    %cst_43 = arith.constant 1.280000e+02 : f32
    %85 = vector.broadcast %cst_43 : f32 to vector<8x1xf32>
    %86 = arith.divf %84, %85 : vector<8x1xf32>
    %87 = vector.broadcast %86 : vector<8x1xf32> to vector<8x128xf32>
    %88 = arith.subf %82, %87 : vector<8x128xf32>
    %89 = arith.mulf %88, %88 : vector<8x128xf32>
    %cst_44 = arith.constant dense<0.000000e+00> : vector<8xf32>
    %90 = vector.multi_reduction <add>, %89, %cst_44 [1] : vector<8x128xf32> to vector<8xf32>
    %91 = vector.shape_cast %90 : vector<8xf32> to vector<8x1xf32>
    %cst_45 = arith.constant 0.00787401571 : f32
    %92 = vector.broadcast %cst_45 : f32 to vector<8x1xf32>
    %93 = arith.mulf %91, %92 : vector<8x1xf32>
    %94 = math.sqrt %93 : vector<8x1xf32>
    %cst_46 = arith.constant 9.99999997E-7 : f32
    %95 = vector.broadcast %cst_46 : f32 to vector<8x1xf32>
    %96 = arith.addf %94, %95 : vector<8x1xf32>
    %97 = tpu.reciprocal %96 : vector<8x1xf32> -> vector<8x1xf32>
    %98 = vector.broadcast %97 : vector<8x1xf32> to vector<8x128xf32>
    %99 = arith.mulf %88, %98 : vector<8x128xf32>
    %c1_47 = arith.constant 1 : index
    %c0_48 = arith.constant 0 : index
    %c0_49 = arith.constant 0 : index
    %100 = vector.load %arg6[%c1_47, %c0_48, %c0_49] : memref<2x128x256xf32, #tpu.memory_space<vmem>>, vector<1x128x256xf32>
    %101 = vector.shape_cast %100 : vector<1x128x256xf32> to vector<128x256xf32>
    %cst_50 = arith.constant dense<0.000000e+00> : vector<8x256xf32>
    %102 = tpu.matmul %99, %101, %cst_50 {dimension_numbers = #tpu.dot_dimension_numbers<[1], [0], [0], [1], [0, 0, 1, 1], [], []>} : vector<8x128xf32>, vector<128x256xf32>, vector<8x256xf32> -> vector<8x256xf32>
    %c1_51 = arith.constant 1 : index
    %c0_52 = arith.constant 0 : index
    %103 = vector.load %arg7[%c1_51, %c0_52] : memref<2x256xf32, #tpu.memory_space<vmem>>, vector<1x256xf32>
    %104 = vector.broadcast %103 : vector<1x256xf32> to vector<8x256xf32>
    %105 = arith.addf %102, %104 : vector<8x256xf32>
    %cst_53 = arith.constant 0.000000e+00 : f32
    %106 = vector.broadcast %cst_53 : f32 to vector<8x256xf32>
    %107 = arith.maximumf %105, %106 : vector<8x256xf32>
    %c1_54 = arith.constant 1 : index
    %c0_55 = arith.constant 0 : index
    %c0_56 = arith.constant 0 : index
    %108 = vector.load %arg8[%c1_54, %c0_55, %c0_56] : memref<2x256x128xf32, #tpu.memory_space<vmem>>, vector<1x256x128xf32>
    %109 = vector.shape_cast %108 : vector<1x256x128xf32> to vector<256x128xf32>
    %cst_57 = arith.constant dense<0.000000e+00> : vector<8x128xf32>
    %110 = tpu.matmul %107, %109, %cst_57 {dimension_numbers = #tpu.dot_dimension_numbers<[1], [0], [0], [1], [0, 0, 1, 1], [], []>} : vector<8x256xf32>, vector<256x128xf32>, vector<8x128xf32> -> vector<8x128xf32>
    %111 = arith.addf %82, %110 : vector<8x128xf32>
    %c0_58 = arith.constant 0 : index
    %c0_59 = arith.constant 0 : index
    %112 = vector.load %arg9[%c0_58, %c0_59] : memref<1x128xf32, #tpu.memory_space<vmem>>, vector<1x128xf32>
    %cst_60 = arith.constant dense<0.000000e+00> : vector<8xf32>
    %113 = vector.multi_reduction <add>, %111, %cst_60 [1] : vector<8x128xf32> to vector<8xf32>
    %114 = vector.shape_cast %113 : vector<8xf32> to vector<8x1xf32>
    %cst_61 = arith.constant 1.280000e+02 : f32
    %115 = vector.broadcast %cst_61 : f32 to vector<8x1xf32>
    %116 = arith.divf %114, %115 : vector<8x1xf32>
    %117 = vector.broadcast %116 : vector<8x1xf32> to vector<8x128xf32>
    %118 = arith.subf %111, %117 : vector<8x128xf32>
    %119 = arith.mulf %118, %118 : vector<8x128xf32>
    %cst_62 = arith.constant dense<0.000000e+00> : vector<8xf32>
    %120 = vector.multi_reduction <add>, %119, %cst_62 [1] : vector<8x128xf32> to vector<8xf32>
    %121 = vector.shape_cast %120 : vector<8xf32> to vector<8x1xf32>
    %cst_63 = arith.constant 0.00787401571 : f32
    %122 = vector.broadcast %cst_63 : f32 to vector<8x1xf32>
    %123 = arith.mulf %121, %122 : vector<8x1xf32>
    %124 = math.sqrt %123 : vector<8x1xf32>
    %cst_64 = arith.constant 9.99999997E-7 : f32
    %125 = vector.broadcast %cst_64 : f32 to vector<8x1xf32>
    %126 = arith.addf %124, %125 : vector<8x1xf32>
    %127 = tpu.reciprocal %126 : vector<8x1xf32> -> vector<8x1xf32>
    %128 = vector.broadcast %127 : vector<8x1xf32> to vector<8x128xf32>
    %129 = arith.mulf %118, %128 : vector<8x128xf32>
    %130 = vector.broadcast %112 : vector<1x128xf32> to vector<8x128xf32>
    %131 = arith.mulf %130, %129 : vector<8x128xf32>
    %c0_65 = arith.constant 0 : index
    %c0_66 = arith.constant 0 : index
    %132 = vector.load %arg10[%c0_65, %c0_66] : memref<1x128xf32, #tpu.memory_space<vmem>>, vector<1x128xf32>
    %133 = vector.broadcast %132 : vector<1x128xf32> to vector<8x128xf32>
    %134 = arith.addf %131, %133 : vector<8x128xf32>
    %c0_67 = arith.constant 0 : index
    %c0_68 = arith.constant 0 : index
    %135 = vector.load %arg11[%c0_67, %c0_68] : memref<8x128xf32, #tpu.memory_space<vmem>>, vector<8x128xf32>
    tpu.vector_store %arg11[%c0_67, %c0_68], %134 {strides = array<i32>} : memref<8x128xf32, #tpu.memory_space<vmem>>, vector<8x128xf32>,
    return
  }
  func.func @transform_0(%arg0: i32) -> (i32, i32) {
    %c0_i32 = arith.constant 0 : i32
    %c0_i32_0 = arith.constant 0 : i32
    return %arg0, %c0_i32 : i32, i32
  }
  func.func @transform_1(%arg0: i32) -> (i32, i32) {
    %c0_i32 = arith.constant 0 : i32
    %c0_i32_0 = arith.constant 0 : i32
    %c0_i32_1 = arith.constant 0 : i32
    return %c0_i32, %c0_i32_0 : i32, i32
  }
  func.func @transform_2(%arg0: i32) -> (i32, i32) {
    %c0_i32 = arith.constant 0 : i32
    %c0_i32_0 = arith.constant 0 : i32
    %c0_i32_1 = arith.constant 0 : i32
    return %c0_i32, %c0_i32_0 : i32, i32
  }
  func.func @transform_3(%arg0: i32) -> (i32, i32, i32) {
    %c0_i32 = arith.constant 0 : i32
    %c0_i32_0 = arith.constant 0 : i32
    %c0_i32_1 = arith.constant 0 : i32
    %c0_i32_2 = arith.constant 0 : i32
    return %c0_i32, %c0_i32_0, %c0_i32_1 : i32, i32, i32
  }
  func.func @transform_4(%arg0: i32) -> (i32, i32) {
    %c0_i32 = arith.constant 0 : i32
    %c0_i32_0 = arith.constant 0 : i32
    %c0_i32_1 = arith.constant 0 : i32
    return %c0_i32, %c0_i32_0 : i32, i32
  }
  func.func @transform_5(%arg0: i32) -> (i32, i32, i32) {
    %c0_i32 = arith.constant 0 : i32
    %c0_i32_0 = arith.constant 0 : i32
    %c0_i32_1 = arith.constant 0 : i32
    %c0_i32_2 = arith.constant 0 : i32
    return %c0_i32, %c0_i32_0, %c0_i32_1 : i32, i32, i32
  }
  func.func @transform_6(%arg0: i32) -> (i32, i32) {
    %c0_i32 = arith.constant 0 : i32
    %c0_i32_0 = arith.constant 0 : i32
    %c0_i32_1 = arith.constant 0 : i32
    return %c0_i32, %c0_i32_0 : i32, i32
  }
  func.func @transform_7(%arg0: i32) -> (i32, i32, i32) {
    %c0_i32 = arith.constant 0 : i32
    %c0_i32_0 = arith.constant 0 : i32
    %c0_i32_1 = arith.constant 0 : i32
    %c0_i32_2 = arith.constant 0 : i32
    return %c0_i32, %c0_i32_0, %c0_i32_1 : i32, i32, i32
  }
  func.func @transform_8(%arg0: i32) -> (i32, i32) {
    %c0_i32 = arith.constant 0 : i32
    %c0_i32_0 = arith.constant 0 : i32
    %c0_i32_1 = arith.constant 0 : i32
    return %c0_i32, %c0_i32_0 : i32, i32
  }
  func.func @transform_9(%arg0: i32) -> (i32, i32) {
    %c0_i32 = arith.constant 0 : i32
    %c0_i32_0 = arith.constant 0 : i32
    %c0_i32_1 = arith.constant 0 : i32
    return %c0_i32, %c0_i32_0 : i32, i32
  }
  func.func @transform_10(%arg0: i32) -> (i32, i32) {
    %c0_i32 = arith.constant 0 : i32
    %c0_i32_0 = arith.constant 0 : i32
    return %arg0, %c0_i32 : i32, i32
  }
}

</mosaic_0001>

<bundles_post_ra>
// kernel: encoder_pallas.1
= control target key start
LH: loop header
LB: loop body
LE: loop exit
PB: predicated region body
PF: predicated region fallthrough
CT: control target
= control target key end

     0   :  { %s2507_s0 = inlined_call_operand.vmem [shape: f32[16,128], index: 0, kind: input, shape index: {}]   ;;  %s2508_s1 = inlined_call_operand.vmem [shape: f32[128,128], index: 1, kind: input, shape index: {}]   ;;  %s2509_s2 = inlined_call_operand.vmem [shape: f32[1,128], index: 2, kind: input, shape index: {}]   ;;  %s2510_s3 = inlined_call_operand.vmem [shape: f32[2,128,128], index: 3, kind: input, shape index: {}]   ;;  %s2511_s4 = inlined_call_operand.vmem [shape: f32[2,128], index: 4, kind: input, shape index: {}]   ;;  %s2512_s5 = inlined_call_operand.vmem [shape: f32[2,128,256], index: 5, kind: input, shape index: {}]   ;;  %s2513_s6 = inlined_call_operand.vmem [shape: f32[2,256], index: 6, kind: input, shape index: {}]   ;;  %s2514_s7 = inlined_call_operand.vmem [shape: f32[2,256,128], index: 7, kind: input, shape index: {}]   ;;  %s2515_s8 = inlined_call_operand.vmem [shape: f32[1,128], index: 8, kind: input, shape index: {}]   ;;  %s2516_s9 = inlined_call_operand.vmem [shape: f32[1,128], index: 9, kind: input, shape index: {}]   ;;  %s2517_s10 = inlined_call_operand.hbm [shape: f32[16,128], index: 10, kind: output, shape index: {}]  }
   0x1   :  { %2518 = sst [smem:[#allocation5_spill]] %s2507_s0 }
   0x2   :  { %2519 = sst [smem:[#allocation6_spill]] %s2508_s1 }
   0x3   :  { %2520 = sst [smem:[#allocation7_spill]] %s2509_s2 }
   0x4   :  { %15 = vsyncpa [#allocation3], 0 }
   0x5   :  { %17 = vsyncpa [#allocation3 + $0x1], 0  ;;  %s1763_s13 = smov 0   ;;  %s1765_s14 = smov 0  }
   0x6   :  { %s1767_s15 = smov 0   ;;  %s1769_s16 = smov 0  }
   0x7 LB: > { %s1784_s17 = sadd.s32 4294967295, %s1703_s16   ;;  %s1260_s18 = sadd.s32 4294967294, %s1703_s16   ;;  %s1703_s16 = sphi %s1769_s16, %s2529_s16   ;;  %s1699_s15 = sphi %s1767_s15, %s2528_s15   ;;  %s1695_s14 = sphi %s1765_s14, %s2527_s14   ;;  %s1691_s13 = sphi %s1763_s13, %s2526_s13  }
   0x8   : > { %s1788_s19 = sadd.s32 1, %s1703_s16   ;;  %s245_s20 = sadd.s32 1, %s1699_s15 }
   0x9   : > { %s242_s21 = ssub.s32 %s1703_s16, %s1788_s19  ;;  %p255_p0 = scmp.ne.s32.totalorder %s1699_s15, %s1695_s14 }
   0xa   : > { %p243_p1 = scmp.eq.s32.totalorder %s242_s21, 0  ;;  %p256_p2 = scmp.eq.s32.totalorder %s1784_s17, 1 }
   0xb   : > { %p261_p3 = scmp.ne.s32.totalorder %s1695_s14, %s1691_s13  ;;  %p262_p4 = scmp.eq.s32.totalorder %s1260_s18, 1 }
   0xc   : > { %s1799_s22 = scalar_select %p243_p1, %s1699_s15, %s245_s20  }
   0xd   : > { %p1801_p5 = por %p256_p2, %p255_p0  ;;  %p1805_p6 = por %p262_p4, %p261_p3 }
   0xe   : > { %p1263_p7 = scmp.ge.s32.totalorder %s1703_s16, 1  ;;  %p314_p8 = scmp.lt.s32.totalorder %s1703_s16, 3 }
  0x10   : > { %p315_p9 = pnand %p1263_p7, %p314_p8 }
  0x11   : > { %s2523_s1 = sld [smem:[#allocation6_spill]] (!%p315_p9)  ;;  %p351_p10 = scmp.lt.s32.totalorder (!%p315_p9), %s1784_s17, 1 }
  0x12   : > { %318 = sbr.rel (%p315_p9) target bundleno = 3060 (0xbf4), region = 60  ;;  %s2524_s0 = sld [smem:[#allocation5_spill]] (!%p315_p9) }
  0x13   : > { %s2525_s2 = sld [smem:[#allocation7_spill]] (!%p315_p9)  ;;  %s348_s29 = sand.u32 (!%p315_p9), 1, %s1695_s14  }
  0x14   : > { %s1264_s11 = sshll.u32 (!%p315_p9), %s348_s29, 3  ;;  %s1353_s21 = sshll.u32 (!%p315_p9), %s1784_s17, 7 }
  0x15   : > { %s350_s26 = scalar_lea.vmem (!%p315_p9), [#allocation2], %s1264_s11 }
  0x17   : > { %v371_v0 = vld [vmem:[%s2523_s1 + $0x78] sm:$0xff]  ;;  %v1705_v1 = vmov 0.0   ;;  %v370_v2 = vld [vmem:[%s2523_s1 + $0x70] sm:$0xff]  ;;  %vm1706_vm0 = vmmov 0   ;;  %v369_v3 = vld [vmem:[%s2523_s1 + $0x68] sm:$0xff]  ;;  %s352_s25 = scalar_select %p351_p10, %s1784_s17, 1 }
  0x18   : > { %1477 = vmatprep.subr.mxu0 %v1705_v1  ;;  %1509 = vmatprep.mubr.msk.f32.mxu0 %vm1706_vm0, %v1705_v1  ;;  %v368_v4 = vld [vmem:[%s2523_s1 + $0x60] sm:$0xff]  ;;  %v367_v5 = vld [vmem:[%s2523_s1 + $0x58] sm:$0xff]  ;;  %v366_v6 = vld [vmem:[%s2523_s1 + $0x50] sm:$0xff] }
  0x19   : > { %1478 = vmatpush3.msra.mxu0 %v371_v0  ;;  %1512 = vmatprep.subr.mxu1 %v1705_v1  ;;  %v365_v7 = vld [vmem:[%s2523_s1 + $0x48] sm:$0xff]  ;;  %v364_v8 = vld [vmem:[%s2523_s1 + $0x40] sm:$0xff]  ;;  %v363_v9 = vld [vmem:[%s2523_s1 + $0x38] sm:$0xff]  ;;  %s1265_s30 = sshll.u32 %s352_s25, 3 }
  0x1a   : > { %1479 = vmatprep.subr.mxu0 %v1705_v1  ;;  %1544 = vmatprep.mubr.msk.f32.mxu1 %vm1706_vm0, %v1705_v1  ;;  %v362_v10 = vld [vmem:[%s2523_s1 + $0x30] sm:$0xff]  ;;  %v361_v11 = vld [vmem:[%s2523_s1 + $0x28] sm:$0xff]  ;;  %v360_v12 = vld [vmem:[%s2523_s1 + $0x20] sm:$0xff]  ;;  %s354_s27 = scalar_lea.vmem %s2524_s0, %s1265_s30  ;;  %s1199_s0 = scalar_lea.hbm %s2517_s10, %s1353_s21 }
  0x1b   : > { %1480 = vmatpush3.msra.mxu0 %v370_v2  ;;  %v359_v13 = vld [vmem:[%s2523_s1 + $0x18] sm:$0xff]  ;;  %v358_v14 = vld [vmem:[%s2523_s1 + $0x10] sm:$0xff]  ;;  %v357_v15 = vld [vmem:[%s2523_s1 + $0x8] sm:$0xff]  ;;  %s1707_s30 = smov [#allocation2]  }
  0x1c   : > { %1481 = vmatprep.subr.mxu0 %v1705_v1  ;;  %v356_v16 = vld [vmem:[%s2523_s1] sm:$0xff]  ;;  %v483_v26 = vld [vmem:[%s2510_s3 + $0x78] sm:$0xff]  ;;  %v482_v27 = vld [vmem:[%s2510_s3 + $0x70] sm:$0xff]  ;;  %s1188_s1 = scalar_lea.sflag [#allocation3], %s348_s29  ;;  %s1647_s12 = sshll.u32 %s1707_s30, 4  ;;  %s1648_s12 = int_to_ptr.vmem [resolvable:$false] %s1647_s12 }
  0x1d   : > { %1482 = vmatpush3.msra.mxu0 %v369_v3  ;;  %v355_v17 = vld [vmem:[%s354_s27] sm:$0xff]  ;;  %1513 = vmatpush3.msra.mxu1 %v483_v26  ;;  %v481_v28 = vld [vmem:[%s2510_s3 + $0x68] sm:$0xff]  ;;  %v479_v30 = vld [vmem:[%s2510_s3 + $0x58] sm:$0xff]  ;;  %s1201_s27 = sshll.u32 %s350_s26, 4  ;;  %s1649_s17 = scalar_lea.vmem %s1648_s12, 256  ;;  %s1202_s27 = int_to_ptr.vmem [resolvable:$true] %s1201_s27 }
  0x1e   : > { %1483 = vmatprep.subr.mxu0 %v1705_v1  ;;  %v1266_v18 = vld [vmem:[%s2525_s2] ss:$0 sm:$0xff]  ;;  %1514 = vmatprep.subr.mxu1 %v1705_v1  ;;  %v478_v31 = vld [vmem:[%s2510_s3 + $0x50] sm:$0xff]  ;;  %v477_v32 = vld [vmem:[%s2510_s3 + $0x48] sm:$0xff]  ;;  %s1643_s2 = scalar_lea.vmem %s1202_s27, 128  ;;  %p1650_p0 = scmp.lt.s32.totalorder %s1202_s27, %s1648_s12 }
  0x1f   : > { %1484 = vmatpush3.msra.mxu0 %v368_v4  ;;  %1515 = vmatpush3.msra.mxu1 %v482_v27  ;;  %v480_v29 = vld [vmem:[%s2510_s3 + $0x60] sm:$0xff]  ;;  %v475_v34 = vld [vmem:[%s2510_s3 + $0x38] sm:$0xff]  ;;  %v474_v35 = vld [vmem:[%s2510_s3 + $0x30] sm:$0xff]  ;;  %p1644_p11 = scmp.ne.s32.totalorder %s1202_s27, %s1643_s2  ;;  %p1651_p1 = scmp.lt.s32.totalorder %s1649_s17, %s1643_s2 }
  0x20   : > { %1485 = vmatprep.subr.mxu0 %v1705_v1  ;;  %1516 = vmatprep.subr.mxu1 %v1705_v1  ;;  %v476_v33 = vld [vmem:[%s2510_s3 + $0x40] sm:$0xff]  ;;  %v473_v36 = vld [vmem:[%s2510_s3 + $0x28] sm:$0xff]  ;;  %v471_v38 = vld [vmem:[%s2510_s3 + $0x18] sm:$0xff] }
  0x21   : > { %1486 = vmatpush3.msra.mxu0 %v367_v5  ;;  %1517 = vmatpush3.msra.mxu1 %v481_v28  ;;  %v472_v37 = vld [vmem:[%s2510_s3 + $0x20] sm:$0xff]  ;;  %v470_v39 = vld [vmem:[%s2510_s3 + $0x10] sm:$0xff]  ;;  %v469_v40 = vld [vmem:[%s2510_s3 + $0x8] sm:$0xff]  ;;  %p1645_p12 = pnand %p1644_p11, %p1801_p5  ;;  %p1652_p2 = por %p1651_p1, %p1650_p0 }
  0x22   : > { %1487 = vmatprep.subr.mxu0 %v1705_v1  ;;  %1518 = vmatprep.subr.mxu1 %v1705_v1  ;;  %v468_v41 = vld [vmem:[%s2510_s3] sm:$0xff]  ;;  %v610_v61 = vld [vmem:[%s2512_s5 + $0xf8] sm:$0xff]  ;;  %v609_v62 = vld [vmem:[%s2512_s5 + $0xf0] sm:$0xff] }
  0x23   : > { %1488 = vmatpush3.msra.mxu0 %v366_v6  ;;  %1519 = vmatpush3.msra.mxu1 %v480_v29  ;;  %v1267_v53 = vld [vmem:[%s2511_s4] ss:$0 sm:$0xff]  ;;  %v608_v63 = vld [vmem:[%s2512_s5 + $0xe8] sm:$0xff]  ;;  %v606_v2 = vld [vmem:[%s2512_s5 + $0xd8] sm:$0xff]  ;;  %p1646_p13 = pneg %p1645_p12 }
  0x24   : > { %1489 = vmatprep.subr.mxu0 %v1705_v1  ;;  %1520 = vmatprep.subr.mxu1 %v1705_v1  ;;  %v607_v0 = vld [vmem:[%s2512_s5 + $0xe0] sm:$0xff]  ;;  %v605_v3 = vld [vmem:[%s2512_s5 + $0xd0] sm:$0xff]  ;;  %v604_v4 = vld [vmem:[%s2512_s5 + $0xc8] sm:$0xff] }
  0x25   : > { %1490 = vmatpush3.msra.mxu0 %v365_v7  ;;  %1521 = vmatpush3.msra.mxu1 %v479_v30  ;;  %v603_v5 = vld [vmem:[%s2512_s5 + $0xc0] sm:$0xff]  ;;  %v602_v6 = vld [vmem:[%s2512_s5 + $0xb8] sm:$0xff]  ;;  %v601_v7 = vld [vmem:[%s2512_s5 + $0xb0] sm:$0xff]  ;;  %p1653_p3 = pnand %p1652_p2, %p1646_p13 }
  0x26   : > { %1491 = vmatprep.subr.mxu0 %v1705_v1  ;;  %1522 = vmatprep.subr.mxu1 %v1705_v1  ;;  %v582_v26 = vld [vmem:[%s2512_s5 + $0x18] sm:$0xff]  ;;  %v581_v27 = vld [vmem:[%s2512_s5 + $0x10] sm:$0xff]  ;;  %v580_v28 = vld [vmem:[%s2512_s5 + $0x8] sm:$0xff] }
  0x27   : > { %1492 = vmatpush3.msra.mxu0 %v364_v8  ;;  %1523 = vmatpush3.msra.mxu1 %v478_v31  ;;  %v600_v8 = vld [vmem:[%s2512_s5 + $0xa8] sm:$0xff]  ;;  %v579_v29 = vld [vmem:[%s2512_s5] sm:$0xff]  ;;  %v727_v30 = vld [vmem:[%s2514_s7 + $0xf8] sm:$0xff] }
  0x28   : > { %1493 = vmatprep.subr.mxu0 %v1705_v1  ;;  %1524 = vmatprep.subr.mxu1 %v1705_v1  ;;  %v711_v31 = vld [vmem:[%s2514_s7 + $0x78] sm:$0xff] }
  0x29   : > { %1494 = vmatpush3.msra.mxu0 %v363_v9  ;;  %1525 = vmatpush3.msra.mxu1 %v477_v32  ;;  %v599_v9 = vld [vmem:[%s2512_s5 + $0xa0] sm:$0xff]  ;;  %v726_v32 = vld [vmem:[%s2514_s7 + $0xf0] sm:$0xff] }
  0x2a   : > { %1495 = vmatprep.subr.mxu0 %v1705_v1  ;;  %1526 = vmatprep.subr.mxu1 %v1705_v1 }
  0x2b   : > { %1496 = vmatpush3.msra.mxu0 %v362_v10  ;;  %1527 = vmatpush3.msra.mxu1 %v476_v33  ;;  %v598_v10 = vld [vmem:[%s2512_s5 + $0x98] sm:$0xff]  ;;  %v710_v33 = vld [vmem:[%s2514_s7 + $0x70] sm:$0xff] }
  0x2c   : > { %1497 = vmatprep.subr.mxu0 %v1705_v1  ;;  %1528 = vmatprep.subr.mxu1 %v1705_v1 }
  0x2d   : > { %1498 = vmatpush3.msra.mxu0 %v361_v11  ;;  %1529 = vmatpush3.msra.mxu1 %v475_v34  ;;  %v597_v11 = vld [vmem:[%s2512_s5 + $0x90] sm:$0xff]  ;;  %v725_v34 = vld [vmem:[%s2514_s7 + $0xe8] sm:$0xff] }
  0x2e   : > { %1499 = vmatprep.subr.mxu0 %v1705_v1  ;;  %1530 = vmatprep.subr.mxu1 %v1705_v1 }
  0x2f   : > { %1500 = vmatpush3.msra.mxu0 %v360_v12  ;;  %1531 = vmatpush3.msra.mxu1 %v474_v35  ;;  %v596_v12 = vld [vmem:[%s2512_s5 + $0x88] sm:$0xff] }
  0x30   : > { %1501 = vmatprep.subr.mxu0 %v1705_v1  ;;  %1532 = vmatprep.subr.mxu1 %v1705_v1  ;;  %v709_v35 = vld [vmem:[%s2514_s7 + $0x68] sm:$0xff] }
  0x31   : > { %1502 = vmatpush3.msra.mxu0 %v359_v13  ;;  %1533 = vmatpush3.msra.mxu1 %v473_v36  ;;  %v595_v13 = vld [vmem:[%s2512_s5 + $0x80] sm:$0xff] }
  0x32   : > { %1503 = vmatprep.subr.mxu0 %v1705_v1  ;;  %1534 = vmatprep.subr.mxu1 %v1705_v1  ;;  %v724_v36 = vld [vmem:[%s2514_s7 + $0xe0] sm:$0xff] }
  0x33   : > { %1504 = vmatpush3.msra.mxu0 %v358_v14  ;;  %1535 = vmatpush3.msra.mxu1 %v472_v37  ;;  %v594_v14 = vld [vmem:[%s2512_s5 + $0x78] sm:$0xff]  ;;  %v708_v37 = vld [vmem:[%s2514_s7 + $0x60] sm:$0xff] }
  0x34   : > { %1505 = vmatprep.subr.mxu0 %v1705_v1  ;;  %1536 = vmatprep.subr.mxu1 %v1705_v1 }
  0x35   : > { %1506 = vmatpush3.msra.mxu0 %v357_v15  ;;  %1537 = vmatpush3.msra.mxu1 %v471_v38  ;;  %v593_v15 = vld [vmem:[%s2512_s5 + $0x70] sm:$0xff]  ;;  %v723_v38 = vld [vmem:[%s2514_s7 + $0xd8] sm:$0xff] }
  0x36   : > { %1507 = vmatprep.subr.mxu0 %v1705_v1  ;;  %1538 = vmatprep.subr.mxu1 %v1705_v1 }
  0x37   : > { %1508 = vmatpush3.msra.mxu0 %v356_v16  ;;  %1539 = vmatpush3.msra.mxu1 %v470_v39  ;;  %v592_v16 = vld [vmem:[%s2512_s5 + $0x68] sm:$0xff]  ;;  %v707_v39 = vld [vmem:[%s2514_s7 + $0x58] sm:$0xff] }
  0x38   : > { %1510 = vmatmul.mubr.f32.vlgmr.msra.gmra.mxu0 %v355_v17  ;;  %1540 = vmatprep.subr.mxu1 %v1705_v1  ;;  %v591_v17 = vld [vmem:[%s2512_s5 + $0x60] sm:$0xff] }
  0x39   : > { %687 = vmatprep.mubr.f32.mxu0 %v1705_v1  ;;  %1541 = vmatpush3.msra.mxu1 %v469_v40  ;;  %v722_v40 = vld [vmem:[%s2514_s7 + $0xd0] sm:$0xff] }
  0x3a   : > { %1542 = vmatprep.subr.mxu1 %v1705_v1  ;;  %623 = vmatprep.subr.mxu0 %v610_v61 }
  0x3b   : > { %1543 = vmatpush3.msra.mxu1 %v468_v41  ;;  %624 = vmatpush1.msra.mxu0 %v609_v62  ;;  %v706_v41 = vld [vmem:[%s2514_s7 + $0x50] sm:$0xff] }
  0x3c   : > { %625 = vmatprep.subr.mxu0 %v608_v63  ;;  %1390 = vmatprep.subr.mxu1 %v727_v30 }
  0x3d   : > { %626 = vmatpush1.msra.mxu0 %v607_v0 }
  0x3e   : > { %627 = vmatprep.subr.mxu0 %v606_v2 }
  0x3f   : > { %628 = vmatpush1.msra.mxu0 %v605_v3  ;;  %v715_v3 = vld [vmem:[%s2514_s7 + $0x98] sm:$0xff] }
  0x40   : > { %629 = vmatprep.subr.mxu0 %v604_v4  ;;  %v699_v4 = vld [vmem:[%s2514_s7 + $0x18] sm:$0xff] }
  0x41   : > { %630 = vmatpush1.msra.mxu0 %v603_v5  ;;  %v714_v5 = vld [vmem:[%s2514_s7 + $0x90] sm:$0xff] }
  0x42   : > { %631 = vmatprep.subr.mxu0 %v602_v6  ;;  %v713_v6 = vld [vmem:[%s2514_s7 + $0x88] sm:$0xff] }
  0x43   : > { %632 = vmatpush1.msra.mxu0 %v601_v7  ;;  %v697_v7 = vld [vmem:[%s2514_s7 + $0x8] sm:$0xff] }
  0x44   : > { %633 = vmatprep.subr.mxu0 %v600_v8  ;;  %v712_v8 = vld [vmem:[%s2514_s7 + $0x80] sm:$0xff] }
  0x45   : > { %634 = vmatpush1.msra.mxu0 %v599_v9  ;;  %v696_v9 = vld [vmem:[%s2514_s7] sm:$0xff] }
  0x46   : > { %635 = vmatprep.subr.mxu0 %v598_v10  ;;  %v613_v10 = vlaneseq }
  0x47   : > { %636 = vmatpush1.msra.mxu0 %v597_v11 }
  0x48   : > { %637 = vmatprep.subr.mxu0 %v596_v12  ;;  %v2169_v11 = vshrl.u32 %v613_v10, 7  ;;  %v1308_v10 = vld [vmem:[%s2512_s5 + $0x1b8] sm:$0xff] }
  0x49   : > { %638 = vmatpush1.msra.mxu0 %v595_v13  ;;  %v611_v13 = vld [vmem:[%s2513_s6] ss:$2 sm:$0x3] }
  0x4a   : > { %639 = vmatprep.subr.mxu0 %v594_v14  ;;  %v615_v12 = vsub.s32 0, %v2169_v11  ;;  %v619_v14 = vsub.s32 1, %v2169_v11 }
  0x4b   : > { %640 = vmatpush1.msra.mxu0 %v593_v15 }
  0x4c   : > { %641 = vmatprep.subr.mxu0 %v592_v16  ;;  %v616_v15 = vrot.slane %v611_v13, %v615_v12  ;;  %v620_v16 = vrot.slane %v611_v13, %v619_v14  ;;  %v1307_v13 = vld [vmem:[%s2512_s5 + $0x1b0] sm:$0xff] }
  0x4d   : > { %642 = vmatpush1.msra.mxu0 %v591_v17 }
  0xf8   : > { %v445_v19 = vpop.f32.mrf.mxu0 }
  0xf9   : > { %v1889_v20 = vadd.f32 %v1266_v18, %v445_v19  ;;  %v590_v18 = vld [vmem:[%s2512_s5 + $0x58] sm:$0xff]  ;;  %v589_v19 = vld [vmem:[%s2512_s5 + $0x50] sm:$0xff] }
  0xfa   : > { %v1511_v21 = vpop.f32.mrf.mxu0  ;;  %643 = vmatprep.subr.mxu0 %v590_v18 }
  0xfb   : > { %449 = vadd.xlane.f32.xlu0 %v1889_v20  ;;  %v587_v21 = vld [vmem:[%s2512_s5 + $0x40] sm:$0xff]  ;;  %644 = vmatpush1.msra.mxu0 %v589_v19 }
 0x184   : > { %v450_v22 = vpop.xlane.xlu0 %449 }
 0x185   : > { %v452_v23 = vmul.f32 0.0078125, %v450_v22  ;;  %v586_v22 = vld [vmem:[%s2512_s5 + $0x38] sm:$0xff] }
 0x187   : > { %v1893_v24 = vsub.f32 %v1889_v20, %v452_v23  ;;  %v585_v23 = vld [vmem:[%s2512_s5 + $0x30] sm:$0xff] }
 0x189   : > { %v454_v25 = vmul.f32 %v1893_v24, %v1893_v24 }
 0x18b   : > { %455 = vadd.xlane.f32.xlu0 %v454_v25  ;;  %v583_v25 = vld [vmem:[%s2512_s5 + $0x20] sm:$0xff] }
 0x214   : > { %v456_v42 = vpop.xlane.xlu0 %455 }
 0x215   : > { %v457_v43 = vmul.f32 0.007874016, %v456_v42  ;;  %v721_v42 = vld [vmem:[%s2514_s7 + $0xc8] sm:$0xff] }
 0x217   : > { %1623 = vrsqrt.f32 %v457_v43  ;;  %vm460_vm1 = vcmp.eq.f32.partialorder %v457_v43, inf  ;;  %v463_v46 = vand.u32 2147483648, %v457_v43  ;;  %vm462_vm2 = vcmp.eq.f32.partialorder %v457_v43, 0.0 }
 0x224   : > { %v1624_v44 = vpop.eup %1623 }
 0x225   : > { %v459_v45 = vmul.f32 %v1624_v44, %v457_v43  ;;  %v720_v44 = vld [vmem:[%s2514_s7 + $0xc0] sm:$0xff] }
 0x227   : > { %v461_v47 = vsel %vm460_vm1, %v457_v43, %v459_v45  ;;  %v705_v43 = vld [vmem:[%s2514_s7 + $0x48] sm:$0xff]  ;;  %v704_v45 = vld [vmem:[%s2514_s7 + $0x40] sm:$0xff] }
 0x228   : > { %v464_v48 = vsel %vm462_vm2, %v463_v46, %v461_v47  ;;  %v719_v46 = vld [vmem:[%s2514_s7 + $0xb8] sm:$0xff] }
 0x229   : > { %v465_v49 = vadd.f32 1e-06, %v464_v48  ;;  %v703_v47 = vld [vmem:[%s2514_s7 + $0x38] sm:$0xff]  ;;  %v718_v48 = vld [vmem:[%s2514_s7 + $0xb0] sm:$0xff] }
 0x22b   : > { %1625 = vrcp.f32 %v465_v49  ;;  %v702_v49 = vld [vmem:[%s2514_s7 + $0x30] sm:$0xff] }
 0x238   : > { %v1626_v50 = vpop.eup %1625 }
 0x239   : > { %v467_v51 = vmul.f32 %v1626_v50, %v1893_v24  ;;  %v584_v24 = vld [vmem:[%s2512_s5 + $0x28] sm:$0xff] }
 0x23a   : > { %v717_v50 = vld [vmem:[%s2514_s7 + $0xa8] sm:$0xff] }
 0x23b   : > { %1545 = vmatmul.mubr.f32.vlgmr.msra.gmra.mxu1 %v467_v51  ;;  %v701_v51 = vld [vmem:[%s2514_s7 + $0x28] sm:$0xff] }
 0x23c   : > { %1391 = vmatpush3.msra.mxu1 %v711_v31  ;;  %v1283_v31 = vld [vmem:[%s2510_s3 + $0xf8] sm:$0xff] }
 0x23d   : > { %1392 = vmatprep.subr.mxu1 %v726_v32  ;;  %v1281_v32 = vld [vmem:[%s2510_s3 + $0xe8] sm:$0xff] }
 0x23e   : > { %1393 = vmatpush3.msra.mxu1 %v710_v33  ;;  %v1280_v33 = vld [vmem:[%s2510_s3 + $0xe0] sm:$0xff] }
 0x23f   : > { %1394 = vmatprep.subr.mxu1 %v725_v34  ;;  %v1279_v34 = vld [vmem:[%s2510_s3 + $0xd8] sm:$0xff] }
 0x240   : > { %1395 = vmatpush3.msra.mxu1 %v709_v35  ;;  %v1278_v35 = vld [vmem:[%s2510_s3 + $0xd0] sm:$0xff] }
 0x241   : > { %1396 = vmatprep.subr.mxu1 %v724_v36  ;;  %v1277_v36 = vld [vmem:[%s2510_s3 + $0xc8] sm:$0xff] }
 0x242   : > { %1397 = vmatpush3.msra.mxu1 %v708_v37  ;;  %v1276_v37 = vld [vmem:[%s2510_s3 + $0xc0] sm:$0xff] }
 0x243   : > { %1398 = vmatprep.subr.mxu1 %v723_v38  ;;  %v1275_v38 = vld [vmem:[%s2510_s3 + $0xb8] sm:$0xff] }
 0x244   : > { %1399 = vmatpush3.msra.mxu1 %v707_v39  ;;  %v1274_v39 = vld [vmem:[%s2510_s3 + $0xb0] sm:$0xff] }
 0x245   : > { %1400 = vmatprep.subr.mxu1 %v722_v40  ;;  %v1273_v40 = vld [vmem:[%s2510_s3 + $0xa8] sm:$0xff] }
 0x246   : > { %1401 = vmatpush3.msra.mxu1 %v706_v41  ;;  %v1272_v41 = vld [vmem:[%s2510_s3 + $0xa0] sm:$0xff] }
 0x247   : > { %1402 = vmatprep.subr.mxu1 %v721_v42  ;;  %v1271_v42 = vld [vmem:[%s2510_s3 + $0x98] sm:$0xff] }
 0x248   : > { %1403 = vmatpush3.msra.mxu1 %v705_v43  ;;  %v1270_v43 = vld [vmem:[%s2510_s3 + $0x90] sm:$0xff] }
 0x249   : > { %1404 = vmatprep.subr.mxu1 %v720_v44  ;;  %v1269_v44 = vld [vmem:[%s2510_s3 + $0x88] sm:$0xff] }
 0x24a   : > { %1405 = vmatpush3.msra.mxu1 %v704_v45  ;;  %v1268_v45 = vld [vmem:[%s2510_s3 + $0x80] sm:$0xff] }
 0x24b   : > { %1406 = vmatprep.subr.mxu1 %v719_v46 }
 0x24c   : > { %1407 = vmatpush3.msra.mxu1 %v703_v47 }
 0x24d   : > { %1408 = vmatprep.subr.mxu1 %v718_v48 }
 0x24e   : > { %1409 = vmatpush3.msra.mxu1 %v702_v49 }
 0x24f   : > { %1410 = vmatprep.subr.mxu1 %v717_v50 }
 0x250   : > { %1411 = vmatpush3.msra.mxu1 %v701_v51 }
 0x2fb   : > { %v550_v52 = vpop.f32.mrf.mxu1 }
 0x2fc   : > { %v554_v54 = vadd.f32 %v550_v52, %v1889_v20  ;;  %v588_v20 = vld [vmem:[%s2512_s5 + $0x48] sm:$0xff]  ;;  %v716_v52 = vld [vmem:[%s2514_s7 + $0xa0] sm:$0xff] }
 0x2fd   : > { %v1546_v55 = vpop.f32.mrf.mxu1  ;;  %645 = vmatprep.subr.mxu0 %v588_v20  ;;  %1412 = vmatprep.subr.mxu1 %v716_v52 }
 0x2fe   : > { %v1965_v56 = vadd.f32 %v1267_v53, %v554_v54  ;;  %646 = vmatpush1.msra.mxu0 %v587_v21  ;;  %v700_v53 = vld [vmem:[%s2514_s7 + $0x20] sm:$0xff] }
 0x2ff   : > { %647 = vmatprep.subr.mxu0 %v586_v22  ;;  %1413 = vmatpush3.msra.mxu1 %v700_v53 }
 0x300   : > { %561 = vadd.xlane.f32.xlu1 %v1965_v56  ;;  %648 = vmatpush1.msra.mxu0 %v585_v23 }
 0x301   : > { %649 = vmatprep.subr.mxu0 %v584_v24  ;;  %1414 = vmatprep.subr.mxu1 %v715_v3  ;;  %v1316_v3 = vld [vmem:[%s2512_s5 + $0x1f8] sm:$0xff] }
 0x302   : > { %650 = vmatpush1.msra.mxu0 %v583_v25  ;;  %1415 = vmatpush3.msra.mxu1 %v699_v4  ;;  %v1315_v4 = vld [vmem:[%s2512_s5 + $0x1f0] sm:$0xff] }
 0x303   : > { %651 = vmatprep.subr.mxu0 %v582_v26  ;;  %1416 = vmatprep.subr.mxu1 %v714_v5  ;;  %v1314_v5 = vld [vmem:[%s2512_s5 + $0x1e8] sm:$0xff] }
 0x304   : > { %652 = vmatpush1.msra.mxu0 %v581_v27 }
 0x305   : > { %653 = vmatprep.subr.mxu0 %v580_v28 }
 0x306   : > { %654 = vmatpush1.msra.mxu0 %v579_v29 }
 0x307   : > { %1547 = vmatprep.subr.mxu0 %v1705_v1 }
 0x389   : > { %v562_v57 = vpop.xlane.xlu1 %561 }
 0x38a   : > { %v563_v58 = vmul.f32 0.0078125, %v562_v57 }
 0x38c   : > { %v1969_v59 = vsub.f32 %v1965_v56, %v563_v58 }
 0x38e   : > { %v565_v60 = vmul.f32 %v1969_v59, %v1969_v59 }
 0x390   : > { %566 = vadd.xlane.f32.xlu1 %v565_v60 }
 0x419   : > { %v567_v54 = vpop.xlane.xlu1 %566 }
 0x41a   : > { %v568_v55 = vmul.f32 0.007874016, %v567_v54 }
 0x41c   : > { %1627 = vrsqrt.f32 %v568_v55  ;;  %vm571_vm3 = vcmp.eq.f32.partialorder %v568_v55, inf  ;;  %v574_v60 = vand.u32 2147483648, %v568_v55  ;;  %vm573_vm4 = vcmp.eq.f32.partialorder %v568_v55, 0.0 }
 0x429   : > { %v1628_v57 = vpop.eup %1627 }
 0x42a   : > { %v570_v58 = vmul.f32 %v1628_v57, %v568_v55 }
 0x42c   : > { %v572_v61 = vsel %vm571_vm3, %v568_v55, %v570_v58 }
 0x42d   : > { %v575_v62 = vsel %vm573_vm4, %v574_v60, %v572_v61 }
 0x42e   : > { %v576_v63 = vadd.f32 1e-06, %v575_v62 }
 0x430   : > { %1629 = vrcp.f32 %v576_v63 }
 0x43d   : > { %v1630_v0 = vpop.eup %1629 }
 0x43e   : > { %v578_v2 = vmul.f32 %v1630_v0, %v1969_v59  ;;  %v698_v59 = vld [vmem:[%s2514_s7 + $0x10] sm:$0xff] }
 0x43f   : > { %1417 = vmatpush3.msra.mxu1 %v698_v59  ;;  %v1313_v59 = vld [vmem:[%s2512_s5 + $0x1e0] sm:$0xff] }
 0x440   : > { %688 = vmatmul.mubr.f32.vlgmr.msra.gmra.mxu0 %v578_v2  ;;  %1418 = vmatprep.subr.mxu1 %v713_v6  ;;  %v1312_v6 = vld [vmem:[%s2512_s5 + $0x1d8] sm:$0xff] }
 0x441   : > { %1579 = vmatprep.mubr.msk.f32.mxu0 %vm1706_vm0, %v1705_v1  ;;  %1419 = vmatpush3.msra.mxu1 %v697_v7  ;;  %v1311_v7 = vld [vmem:[%s2512_s5 + $0x1d0] sm:$0xff] }
 0x442   : > { %1420 = vmatprep.subr.mxu1 %v712_v8  ;;  %1548 = vmatpush3.msra.mxu0 %v1283_v31  ;;  %v1310_v8 = vld [vmem:[%s2512_s5 + $0x1c8] sm:$0xff] }
 0x443   : > { %1421 = vmatpush3.msra.mxu1 %v696_v9  ;;  %1549 = vmatprep.subr.mxu0 %v1705_v1  ;;  %v1309_v9 = vld [vmem:[%s2512_s5 + $0x1c0] sm:$0xff]  ;;  %v1290_v31 = vld [vmem:[%s2512_s5 + $0x128] sm:$0xff] }
 0x444   : > { %975 = vmatprep.subr.mxu1 %v1316_v3 }
 0x500   : > { %v689_v17 = vpop.f32.mrf.mxu0 }
 0x501   : > { %v690_v18 = vadd.f32 %v689_v17, %v616_v15  ;;  %v1306_v15 = vld [vmem:[%s2512_s5 + $0x1a8] sm:$0xff]  ;;  %v1304_v17 = vld [vmem:[%s2512_s5 + $0x198] sm:$0xff] }
 0x502   : > { %v691_v19 = vpop.f32.mrf.mxu0 }
 0x503   : > { %v692_v20 = vadd.f32 %v691_v19, %v620_v16  ;;  %v694_v22 = vmax.f32 %v690_v18, 0.0  ;;  %v1305_v16 = vld [vmem:[%s2512_s5 + $0x1a0] sm:$0xff]  ;;  %v1303_v18 = vld [vmem:[%s2512_s5 + $0x190] sm:$0xff]  ;;  %v1302_v19 = vld [vmem:[%s2512_s5 + $0x188] sm:$0xff] }
 0x505   : > { %v695_v21 = vmax.f32 %v692_v20, 0.0  ;;  %v1301_v20 = vld [vmem:[%s2512_s5 + $0x180] sm:$0xff] }
 0x507   : > { %792 = vmatprep.mubr.f32.mxu1 %v695_v21  ;;  %v1300_v21 = vld [vmem:[%s2512_s5 + $0x178] sm:$0xff] }
 0x508   : > { %793 = vmatmul.mubr.f32.vlgmr.msra.gmra.mxu1 %v694_v22  ;;  %v1299_v22 = vld [vmem:[%s2512_s5 + $0x170] sm:$0xff] }
 0x509   : > { %1039 = vmatprep.mubr.f32.mxu1 %v1705_v1  ;;  %976 = vmatpush1.msra.mxu1 %v1315_v4 }
 0x50a   : > { %977 = vmatprep.subr.mxu1 %v1314_v5 }
 0x50b   : > { %978 = vmatpush1.msra.mxu1 %v1313_v59 }
 0x50c   : > { %979 = vmatprep.subr.mxu1 %v1312_v6 }
 0x50d   : > { %980 = vmatpush1.msra.mxu1 %v1311_v7 }
 0x50e   : > { %981 = vmatprep.subr.mxu1 %v1310_v8 }
 0x50f   : > { %982 = vmatpush1.msra.mxu1 %v1309_v9  ;;  %v1337_v9 = vld [vmem:[%s2514_s7 + $0x198] sm:$0xff] }
 0x510   : > { %983 = vmatprep.subr.mxu1 %v1308_v10  ;;  %v1321_v10 = vld [vmem:[%s2514_s7 + $0x118] sm:$0xff] }
 0x511   : > { %984 = vmatpush1.msra.mxu1 %v1307_v13  ;;  %v1336_v13 = vld [vmem:[%s2514_s7 + $0x190] sm:$0xff] }
 0x512   : > { %985 = vmatprep.subr.mxu1 %v1306_v15  ;;  %v1335_v15 = vld [vmem:[%s2514_s7 + $0x188] sm:$0xff] }
 0x513   : > { %986 = vmatpush1.msra.mxu1 %v1305_v16  ;;  %v1319_v16 = vld [vmem:[%s2514_s7 + $0x108] sm:$0xff] }
 0x514   : > { %987 = vmatprep.subr.mxu1 %v1304_v17  ;;  %v1334_v17 = vld [vmem:[%s2514_s7 + $0x180] sm:$0xff] }
 0x515   : > { %988 = vmatpush1.msra.mxu1 %v1303_v18  ;;  %v1318_v18 = vld [vmem:[%s2514_s7 + $0x100] sm:$0xff] }
 0x516   : > { %989 = vmatprep.subr.mxu1 %v1302_v19  ;;  %v1317_v19 = vld [vmem:[%s2513_s6 + $0x1] ss:$2 sm:$0x3] }
 0x517   : > { %990 = vmatpush1.msra.mxu1 %v1301_v20  ;;  %v968_v20 = vrot.slane %v1317_v19, %v615_v12 }
 0x518   : > { %991 = vmatprep.subr.mxu1 %v1300_v21  ;;  %v972_v21 = vrot.slane %v1317_v19, %v619_v14 }
 0x519   : > { %992 = vmatpush1.msra.mxu1 %v1299_v22 }
 0x5c8   : > { %v1422_v23 = vpop.f32.mrf.mxu1 }
 0x5ca   : > { %v1423_v24 = vpop.f32.mrf.mxu1 }
 0x5cb   : > { %v1424_v25 = vadd.f32 %v1423_v24, %v1422_v23  ;;  %v1298_v23 = vld [vmem:[%s2512_s5 + $0x168] sm:$0xff]  ;;  %v1297_v24 = vld [vmem:[%s2512_s5 + $0x160] sm:$0xff] }
 0x5cc   : > { %993 = vmatprep.subr.mxu1 %v1298_v23 }
 0x5cd   : > { %v2182_v26 = vadd.f32 %v1424_v25, %v1965_v56  ;;  %v1282_v56 = vld [vmem:[%s2510_s3 + $0xf0] sm:$0xff]  ;;  %v1296_v25 = vld [vmem:[%s2512_s5 + $0x158] sm:$0xff]  ;;  %994 = vmatpush1.msra.mxu1 %v1297_v24 }
 0x5ce   : > { %1550 = vmatpush3.msra.mxu0 %v1282_v56  ;;  %995 = vmatprep.subr.mxu1 %v1296_v25  ;;  %v1289_v56 = vld [vmem:[%s2512_s5 + $0x120] sm:$0xff] }
 0x5cf   : > { %799 = vadd.xlane.f32.xlu0 %v2182_v26  ;;  %1551 = vmatprep.subr.mxu0 %v1705_v1 }
 0x5d0   : > { %1552 = vmatpush3.msra.mxu0 %v1281_v32  ;;  %v1288_v32 = vld [vmem:[%s2512_s5 + $0x118] sm:$0xff] }
 0x5d1   : > { %1553 = vmatprep.subr.mxu0 %v1705_v1 }
 0x5d2   : > { %1554 = vmatpush3.msra.mxu0 %v1280_v33  ;;  %v1287_v33 = vld [vmem:[%s2512_s5 + $0x110] sm:$0xff] }
 0x5d3   : > { %1555 = vmatprep.subr.mxu0 %v1705_v1 }
 0x5d4   : > { %1556 = vmatpush3.msra.mxu0 %v1279_v34  ;;  %v1286_v34 = vld [vmem:[%s2512_s5 + $0x108] sm:$0xff] }
 0x5d5   : > { %1557 = vmatprep.subr.mxu0 %v1705_v1 }
 0x5d6   : > { %1558 = vmatpush3.msra.mxu0 %v1278_v35  ;;  %v1285_v35 = vld [vmem:[%s2512_s5 + $0x100] sm:$0xff] }
 0x5d7   : > { %1559 = vmatprep.subr.mxu0 %v1705_v1 }
 0x5d8   : > { %1560 = vmatpush3.msra.mxu0 %v1277_v36  ;;  %v1349_v36 = vld [vmem:[%s2514_s7 + $0x1f8] sm:$0xff] }
 0x5d9   : > { %1561 = vmatprep.subr.mxu0 %v1705_v1 }
 0x5da   : > { %1562 = vmatpush3.msra.mxu0 %v1276_v37  ;;  %v1333_v37 = vld [vmem:[%s2514_s7 + $0x178] sm:$0xff] }
 0x5db   : > { %1563 = vmatprep.subr.mxu0 %v1705_v1 }
 0x5dc   : > { %1564 = vmatpush3.msra.mxu0 %v1275_v38  ;;  %v1348_v38 = vld [vmem:[%s2514_s7 + $0x1f0] sm:$0xff] }
 0x5dd   : > { %1565 = vmatprep.subr.mxu0 %v1705_v1 }
 0x5de   : > { %1566 = vmatpush3.msra.mxu0 %v1274_v39  ;;  %v1332_v39 = vld [vmem:[%s2514_s7 + $0x170] sm:$0xff] }
 0x5df   : > { %1567 = vmatprep.subr.mxu0 %v1705_v1 }
 0x5e0   : > { %1568 = vmatpush3.msra.mxu0 %v1273_v40  ;;  %v1347_v40 = vld [vmem:[%s2514_s7 + $0x1e8] sm:$0xff] }
 0x5e1   : > { %1569 = vmatprep.subr.mxu0 %v1705_v1 }
 0x5e2   : > { %1570 = vmatpush3.msra.mxu0 %v1272_v41  ;;  %v1331_v41 = vld [vmem:[%s2514_s7 + $0x168] sm:$0xff] }
 0x5e3   : > { %1571 = vmatprep.subr.mxu0 %v1705_v1 }
 0x5e4   : > { %1572 = vmatpush3.msra.mxu0 %v1271_v42  ;;  %v1346_v42 = vld [vmem:[%s2514_s7 + $0x1e0] sm:$0xff] }
 0x5e5   : > { %1573 = vmatprep.subr.mxu0 %v1705_v1 }
 0x5e6   : > { %1574 = vmatpush3.msra.mxu0 %v1270_v43  ;;  %v1330_v43 = vld [vmem:[%s2514_s7 + $0x160] sm:$0xff] }
 0x5e7   : > { %1575 = vmatprep.subr.mxu0 %v1705_v1 }
 0x5e8   : > { %1576 = vmatpush3.msra.mxu0 %v1269_v44  ;;  %v1345_v44 = vld [vmem:[%s2514_s7 + $0x1d8] sm:$0xff] }
 0x5e9   : > { %1577 = vmatprep.subr.mxu0 %v1705_v1  ;;  %v1284_v1 = vld [vmem:[%s2511_s4 + $0x1] ss:$0 sm:$0xff] }
 0x5ea   : > { %1578 = vmatpush3.msra.mxu0 %v1268_v45  ;;  %v1329_v45 = vld [vmem:[%s2514_s7 + $0x158] sm:$0xff] }
 0x5eb   : > { %1442 = vmatprep.subr.mxu0 %v1349_v36 }
 0x658   : > { %v800_v27 = vpop.xlane.xlu0 %799 }
 0x659   : > { %v801_v28 = vmul.f32 0.0078125, %v800_v27  ;;  %v1294_v27 = vld [vmem:[%s2512_s5 + $0x148] sm:$0xff] }
 0x65b   : > { %v2186_v29 = vsub.f32 %v2182_v26, %v801_v28  ;;  %v1293_v28 = vld [vmem:[%s2512_s5 + $0x140] sm:$0xff] }
 0x65d   : > { %v803_v30 = vmul.f32 %v2186_v29, %v2186_v29 }
 0x65f   : > { %804 = vadd.xlane.f32.xlu1 %v803_v30  ;;  %v1291_v30 = vld [vmem:[%s2512_s5 + $0x130] sm:$0xff] }
 0x6e8   : > { %v805_v46 = vpop.xlane.xlu1 %804 }
 0x6e9   : > { %v806_v47 = vmul.f32 0.007874016, %v805_v46  ;;  %v1344_v46 = vld [vmem:[%s2514_s7 + $0x1d0] sm:$0xff] }
 0x6eb   : > { %1631 = vrsqrt.f32 %v806_v47  ;;  %vm809_vm5 = vcmp.eq.f32.partialorder %v806_v47, inf  ;;  %v812_v50 = vand.u32 2147483648, %v806_v47  ;;  %vm811_vm6 = vcmp.eq.f32.partialorder %v806_v47, 0.0 }
 0x6f8   : > { %v1632_v48 = vpop.eup %1631 }
 0x6f9   : > { %v808_v49 = vmul.f32 %v1632_v48, %v806_v47  ;;  %v1343_v48 = vld [vmem:[%s2514_s7 + $0x1c8] sm:$0xff] }
 0x6fb   : > { %v810_v51 = vsel %vm809_vm5, %v806_v47, %v808_v49  ;;  %v1328_v47 = vld [vmem:[%s2514_s7 + $0x150] sm:$0xff]  ;;  %v1327_v49 = vld [vmem:[%s2514_s7 + $0x148] sm:$0xff] }
 0x6fc   : > { %v813_v52 = vsel %vm811_vm6, %v812_v50, %v810_v51  ;;  %v1342_v50 = vld [vmem:[%s2514_s7 + $0x1c0] sm:$0xff] }
 0x6fd   : > { %v814_v53 = vadd.f32 1e-06, %v813_v52  ;;  %v1326_v51 = vld [vmem:[%s2514_s7 + $0x140] sm:$0xff]  ;;  %v1341_v52 = vld [vmem:[%s2514_s7 + $0x1b8] sm:$0xff] }
 0x6ff   : > { %1633 = vrcp.f32 %v814_v53  ;;  %v1325_v53 = vld [vmem:[%s2514_s7 + $0x138] sm:$0xff] }
 0x70c   : > { %v1634_v54 = vpop.eup %1633 }
 0x70d   : > { %v816_v55 = vmul.f32 %v1634_v54, %v2186_v29  ;;  %v1292_v29 = vld [vmem:[%s2512_s5 + $0x138] sm:$0xff]  ;;  %v1340_v54 = vld [vmem:[%s2514_s7 + $0x1b0] sm:$0xff] }
 0x70f   : > { %1580 = vmatmul.mubr.f32.vlgmr.msra.gmra.mxu0 %v816_v55  ;;  %v1324_v55 = vld [vmem:[%s2514_s7 + $0x130] sm:$0xff] }
 0x710   : > { %1443 = vmatpush3.msra.mxu0 %v1333_v37 }
 0x711   : > { %1444 = vmatprep.subr.mxu0 %v1348_v38 }
 0x712   : > { %1445 = vmatpush3.msra.mxu0 %v1332_v39 }
 0x713   : > { %1446 = vmatprep.subr.mxu0 %v1347_v40  ;;  %v1350_v40 = vld [vmem:[%s2515_s8] ss:$0 sm:$0xff] }
 0x714   : > { %1447 = vmatpush3.msra.mxu0 %v1331_v41 }
 0x715   : > { %1448 = vmatprep.subr.mxu0 %v1346_v42  ;;  %v1351_v42 = vld [vmem:[%s2516_s9] ss:$0 sm:$0xff] }
 0x716   : > { %1449 = vmatpush3.msra.mxu0 %v1330_v43 }
 0x717   : > { %1450 = vmatprep.subr.mxu0 %v1345_v44 }
 0x718   : > { %1451 = vmatpush3.msra.mxu0 %v1329_v45 }
 0x719   : > { %1452 = vmatprep.subr.mxu0 %v1344_v46 }
 0x71a   : > { %1453 = vmatpush3.msra.mxu0 %v1328_v47 }
 0x71b   : > { %1454 = vmatprep.subr.mxu0 %v1343_v48 }
 0x71c   : > { %1455 = vmatpush3.msra.mxu0 %v1327_v49 }
 0x71d   : > { %1456 = vmatprep.subr.mxu0 %v1342_v50 }
 0x71e   : > { %1457 = vmatpush3.msra.mxu0 %v1326_v51 }
 0x71f   : > { %1458 = vmatprep.subr.mxu0 %v1341_v52 }
 0x720   : > { %1459 = vmatpush3.msra.mxu0 %v1325_v53 }
 0x721   : > { %1460 = vmatprep.subr.mxu0 %v1340_v54 }
 0x722   : > { %1461 = vmatpush3.msra.mxu0 %v1324_v55 }
 0x7cf   : > { %v900_v57 = vpop.f32.mrf.mxu0 }
 0x7d0   : > { %v904_v58 = vadd.f32 %v900_v57, %v2182_v26  ;;  %v1295_v26 = vld [vmem:[%s2512_s5 + $0x150] sm:$0xff]  ;;  %v1339_v57 = vld [vmem:[%s2514_s7 + $0x1a8] sm:$0xff] }
 0x7d1   : > { %v1581_v60 = vpop.f32.mrf.mxu0  ;;  %996 = vmatpush1.msra.mxu1 %v1295_v26  ;;  %1462 = vmatprep.subr.mxu0 %v1339_v57 }
 0x7d2   : > { %v2258_v61 = vadd.f32 %v1284_v1, %v904_v58  ;;  %997 = vmatprep.subr.mxu1 %v1294_v27  ;;  %v1323_v1 = vld [vmem:[%s2514_s7 + $0x128] sm:$0xff]  ;;  %v1338_v58 = vld [vmem:[%s2514_s7 + $0x1a0] sm:$0xff] }
 0x7d3   : > { %998 = vmatpush1.msra.mxu1 %v1293_v28  ;;  %v1322_v60 = vld [vmem:[%s2514_s7 + $0x120] sm:$0xff]  ;;  %1463 = vmatpush3.msra.mxu0 %v1323_v1 }
 0x7d4   : > { %911 = vadd.xlane.f32.xlu0 %v2258_v61  ;;  %999 = vmatprep.subr.mxu1 %v1292_v29 }
 0x7d5   : > { %1000 = vmatpush1.msra.mxu1 %v1291_v30  ;;  %1464 = vmatprep.subr.mxu0 %v1338_v58 }
 0x7d6   : > { %1001 = vmatprep.subr.mxu1 %v1290_v31  ;;  %1465 = vmatpush3.msra.mxu0 %v1322_v60 }
 0x7d7   : > { %1002 = vmatpush1.msra.mxu1 %v1289_v56  ;;  %1466 = vmatprep.subr.mxu0 %v1337_v9 }
 0x7d8   : > { %1003 = vmatprep.subr.mxu1 %v1288_v32  ;;  %1467 = vmatpush3.msra.mxu0 %v1321_v10 }
 0x7d9   : > { %1004 = vmatpush1.msra.mxu1 %v1287_v33  ;;  %1468 = vmatprep.subr.mxu0 %v1336_v13 }
 0x7da   : > { %1005 = vmatprep.subr.mxu1 %v1286_v34 }
 0x7db   : > { %1006 = vmatpush1.msra.mxu1 %v1285_v35 }
 0x85d   : > { %v912_v62 = vpop.xlane.xlu0 %911 }
 0x85e   : > { %v913_v63 = vmul.f32 0.0078125, %v912_v62 }
 0x860   : > { %v2262_v0 = vsub.f32 %v2258_v61, %v913_v63 }
 0x862   : > { %v915_v2 = vmul.f32 %v2262_v0, %v2262_v0 }
 0x864   : > { %916 = vadd.xlane.f32.xlu1 %v915_v2 }
 0x8ed   : > { %v917_v62 = vpop.xlane.xlu1 %916 }
 0x8ee   : > { %v918_v63 = vmul.f32 0.007874016, %v917_v62 }
 0x8f0   : > { %1635 = vrsqrt.f32 %v918_v63  ;;  %vm921_vm7 = vcmp.eq.f32.partialorder %v918_v63, inf  ;;  %v924_v4 = vand.u32 2147483648, %v918_v63  ;;  %vm923_vm8 = vcmp.eq.f32.partialorder %v918_v63, 0.0 }
 0x8fd   : > { %v1636_v2 = vpop.eup %1635 }
 0x8fe   : > { %v920_v3 = vmul.f32 %v1636_v2, %v918_v63 }
 0x900   : > { %v922_v5 = vsel %vm921_vm7, %v918_v63, %v920_v3 }
 0x901   : > { %v925_v59 = vsel %vm923_vm8, %v924_v4, %v922_v5 }
 0x902   : > { %v926_v6 = vadd.f32 1e-06, %v925_v59 }
 0x904   : > { %1637 = vrcp.f32 %v926_v6 }
 0x911   : > { %v1638_v7 = vpop.eup %1637 }
 0x912   : > { %v928_v8 = vmul.f32 %v1638_v7, %v2262_v0  ;;  %v1320_v0 = vld [vmem:[%s2514_s7 + $0x110] sm:$0xff] }
 0x913   : > { %1469 = vmatpush3.msra.mxu0 %v1320_v0 }
 0x914   : > { %1040 = vmatmul.mubr.f32.vlgmr.msra.gmra.mxu1 %v928_v8  ;;  %1470 = vmatprep.subr.mxu0 %v1335_v15 }
 0x915   : > { %1471 = vmatpush3.msra.mxu0 %v1319_v16 }
 0x916   : > { %1472 = vmatprep.subr.mxu0 %v1334_v17 }
 0x917   : > { %1473 = vmatpush3.msra.mxu0 %v1318_v18 }
 0x9d4   : > { %v1041_v22 = vpop.f32.mrf.mxu1 }
 0x9d5   : > { %v1042_v23 = vadd.f32 %v1041_v22, %v968_v20 }
 0x9d6   : > { %v1043_v24 = vpop.f32.mrf.mxu1 }
 0x9d7   : > { %v1044_v25 = vadd.f32 %v1043_v24, %v972_v21  ;;  %v1046_v27 = vmax.f32 %v1042_v23, 0.0 }
 0x9d9   : > { %v1047_v26 = vmax.f32 %v1044_v25, 0.0 }
 0x9db   : > { %1145 = vmatprep.mubr.f32.mxu0 %v1047_v26 }
 0x9dc   : > { %1146 = vmatmul.mubr.f32.vlgmr.msra.gmra.mxu0 %v1046_v27 }
 0xa9c   : > { %v1474_v28 = vpop.f32.mrf.mxu0 }
 0xa9e   : > { %v1475_v29 = vpop.f32.mrf.mxu0 }
 0xa9f   : > { %v1476_v30 = vadd.f32 %v1475_v29, %v1474_v28 }
 0xaa1   : > { %v1151_v31 = vadd.f32 %v1476_v30, %v2258_v61 }
 0xaa3   : > { %1153 = vadd.xlane.f32.xlu0 %v1151_v31 }
 0xb2c   : > { %v1154_v56 = vpop.xlane.xlu0 %1153 }
 0xb2d   : > { %v1155_v32 = vmul.f32 0.0078125, %v1154_v56 }
 0xb2f   : > { %v1156_v12 = vsub.f32 %v1151_v31, %v1155_v32 }
 0xb31   : > { %v1157_v11 = vmul.f32 %v1156_v12, %v1156_v12 }
 0xb33   : > { %1158 = vadd.xlane.f32.xlu1 %v1157_v11 }
 0xbbc   : > { %v1159_v14 = vpop.xlane.xlu1 %1158 }
 0xbbd   : > { %v1160_v33 = vmul.f32 0.007874016, %v1159_v14 }
 0xbbf   : > { %1639 = vrsqrt.f32 %v1160_v33  ;;  %vm1163_vm9 = vcmp.eq.f32.partialorder %v1160_v33, inf  ;;  %v1166_v36 = vand.u32 2147483648, %v1160_v33  ;;  %vm1165_vm10 = vcmp.eq.f32.partialorder %v1160_v33, 0.0 }
 0xbcc   : > { %v1640_v34 = vpop.eup %1639 }
 0xbcd   : > { %v1162_v35 = vmul.f32 %v1640_v34, %v1160_v33 }
 0xbcf   : > { %v1164_v37 = vsel %vm1163_vm9, %v1160_v33, %v1162_v35 }
 0xbd0   : > { %v1167_v38 = vsel %vm1165_vm10, %v1166_v36, %v1164_v37 }
 0xbd1   : > { %v1168_v39 = vadd.f32 1e-06, %v1167_v38 }
 0xbd3   : > { %1641 = vrcp.f32 %v1168_v39 }
 0xbe0   : > { %v1642_v61 = vpop.eup %1641 }
 0xbe1   : > { %v1170_v41 = vmul.f32 %v1642_v61, %v1156_v12 }
 0xbe3   : > { %v1177_v43 = vmul.f32 %v1350_v40, %v1170_v41 }
 0xbe5   : > { %v1185_v44 = vadd.f32 %v1351_v42, %v1177_v43 }
 0xbe7   : > { %1186 = vst [vmem:[%s350_s26] sm:$0xff] %v1185_v44 }
 0xbe8   : > { %1656 = shalt.err (!%p1653_p3)
}
 0xbe9   : > { %s1657_s11 = scalar_lea.hbm %s1199_s0, 128  ;;  %s1661_s20 = scalar_lea.hbm %s2517_s10, 256 }
 0xbea   : > { %p1658_p4 = scmp.ne.s32.totalorder %s1199_s0, %s1657_s11  ;;  %p1662_p9 = scmp.lt.s32.totalorder %s1199_s0, %s2517_s10 }
 0xbeb   : > { %p1663_p10 = scmp.lt.s32.totalorder %s1661_s20, %s1657_s11 }
 0xbec   : > { %p1659_p7 = pnand %p1658_p4, %p1801_p5 }
 0xbed   : > { %p1664_p11 = por %p1663_p10, %p1662_p9 }
 0xbee   : > { %p1660_p8 = pneg %p1659_p7 }
 0xbf0   : > { %p1665_p12 = pnand %p1664_p11, %p1660_p8 }
 0xbf2   : > { %1668 = shalt.err (!%p1665_p12)
}
 0xbf3   : > { %1582 = dma.vmem_to_hbm [thread:$0]  (%p1801_p5), %s1202_s27, 128, %s1199_s0, %s1188_s1  }
 0xbf4 PF: > { %p1588_p13 = scmp.ge.s32.totalorder %s1703_s16, 2  ;;  %s1213_s2 = sand.u32 1, %s1691_s13  }
 0xbf5   : > { %s1214_s25 = scalar_lea.sflag [#allocation3], %s1213_s2 }
 0xbf6   : > { %p1585_p0 = pnand %p1588_p13, %p1805_p6 }
 0xbf8   : > { %p1586_p1 = pneg %p1585_p0 }
 0xbfa   : > { %1686 = dma.done.wait (%p1586_p1), %s1214_s25, 128  }
 0xbfb   : > { %1688 = vsyncadd (%p1586_p1), %s1214_s25, 4294967168  ;;  %p20_p2 = scmp.ge.s32.totalorder %s1788_s19, 4   ;;  %s2526_s13 = smov %s1695_s14 }
 0xbfc   : > { %s2527_s14 = smov %s1699_s15  ;;  %s2528_s15 = smov %s1799_s22 }
 0xbfd   : > { %s2529_s16 = smov %s1788_s19  ;;  %22 = sbr.rel (!%p20_p2) target bundleno = 7 (0x7), region = 99 }
 0xc02   :  { %1219 = vsyncpa [#allocation3], 1 }
 0xc03   :  { %1221 = vsyncpa [#allocation3 + $0x1], 1 }

</bundles_post_ra>
